<compile_context>
chip_gen: v7x
topology: tpu7x:2x2x1
jax: 0.10.0
libtpu: 0.0.40
codegen_flags: <defaults>
</compile_context>

<pallas_src>
import functools

import jax
import jax.numpy as jnp
from jax.experimental import pallas as pl
from jax.experimental.pallas import tpu as pltpu

GAMMA = 1.5
ALPHA = 0.25
LANE = 128
SUBLANE = 8
TARGET_BLOCK_ROWS = 4096   # (4096, 128) f32 = 2 MiB per input block
NUM_PARALLEL = 2           # outer 'parallel' grid axis (2 TCs on v7x; harmless elsewhere)


def _cdiv(a, b):
    return (a + b - 1) // b


def _round_up(x, m):
    return _cdiv(x, m) * m


def _focal_loss_kernel(pred_ref, true_ref, out_ref, *, gamma, alpha,
                       blocks_total, blocks_per_chunk, block_rows, tail_valid):
    p = pl.program_id(0)
    i = pl.program_id(1)
    g = p * blocks_per_chunk + i          # logical (unclamped) global block id

    @pl.when(i == 0)
    def _init():
        out_ref[...] = jnp.zeros_like(out_ref)

    # Trailing grid steps past the last real block (at most NUM_PARALLEL-1 per
    # run; index_map clamps their DMA to a valid tile) contribute nothing.
    @pl.when(g < blocks_total)
    def _compute():
        x = pred_ref[...].astype(jnp.float32)   # logits
        y = true_ref[...].astype(jnp.float32)   # targets in [0, 1]

        # One shared exp(-|x|) feeds both the stable softplus and the sigmoid.
        e = jnp.exp(-jnp.abs(x))                           # EUP exp (once)
        bce = jnp.maximum(x, 0.0) - x * y + jnp.log1p(e)   # stable BCE-with-logits
        s_abs = pl.reciprocal(1.0 + e, approx=True)        # sigmoid(|x|), EUP vrcp
        prob = jnp.where(x >= 0.0, s_abs, 1.0 - s_abs)     # sigmoid(x)

        # 1 - p_t = prob + y - 2*y*prob ; clamp tiny negatives (soft targets)
        # so sqrt/pow can't emit NaN.
        t = jnp.maximum(prob + y - 2.0 * y * prob, 0.0)
        alpha_factor = (1.0 - alpha) + y * (2.0 * alpha - 1.0)
        if gamma == 1.5:
            mod = t * jnp.sqrt(t)      # t**1.5 with one sqrt instead of log+exp
        elif gamma == 2.0:
            mod = t * t
        elif gamma == 1.0:
            mod = t
        else:
            mod = jnp.power(t, gamma)

        loss = bce * alpha_factor * mod

        def accum(vals):
            # Lane-parallel partial sum: fold vreg-aligned (8,128) row groups
            # with VPU adds directly into the VMEM-resident output tile.
            out_ref[...] += jnp.sum(
                vals.reshape(block_rows // SUBLANE, SUBLANE, LANE), axis=0)

        if tail_valid < block_rows * LANE:     # static: is there a tail at all?
            is_tail = g == blocks_total - 1
            # Only the single tail block pays for the mask.
            @pl.when(is_tail)
            def _tail():
                row_id = jax.lax.broadcasted_iota(jnp.int32, (block_rows, LANE), 0)
                lane_id = jax.lax.broadcasted_iota(jnp.int32, (block_rows, LANE), 1)
                idx = row_id * LANE + lane_id          # block-local, no overflow
                accum(jnp.where(idx < tail_valid, loss, 0.0))

            @pl.when(g != blocks_total - 1)
            def _interior():
                accum(loss)
        else:
            accum(loss)


def focal_loss(pred, true, gamma=GAMMA, alpha=ALPHA,
               target_block_rows=TARGET_BLOCK_ROWS):
    """Focal loss with mean reduction. pred/true: same shape, any rank / size.

    Pass bf16 logits/targets directly if the producer emits them (targets 0/1
    are exact in bf16) — the kernel casts to f32 internally, so no wrapper
    cast (and no extra HBM pass) is needed.
    """
    assert pred.shape == true.shape
    total = int(pred.size)
    rows = _cdiv(total, LANE)

    # Split real blocks (not padded rows) across the parallel axis.
    block_rows = max(
        SUBLANE,
        min(target_block_rows, _round_up(_cdiv(rows, NUM_PARALLEL), SUBLANE)),
    )
    blocks_total = _cdiv(rows, block_rows)
    blocks_per_chunk = _cdiv(blocks_total, NUM_PARALLEL)
    # Valid elements inside the last real block (block-local count).
    tail_valid = total - (blocks_total - 1) * block_rows * LANE

    # Only pad to the next multiple of 128 for the 2-D reshape (<= 127 elems;
    # zero-cost for already lane-aligned sizes).
    pred_flat = pred.reshape(-1)
    true_flat = true.reshape(-1)
    lane_pad = rows * LANE - total
    if lane_pad:
        pred_flat = jnp.pad(pred_flat, (0, lane_pad))
        true_flat = jnp.pad(true_flat, (0, lane_pad))
    pred2d = pred_flat.reshape(rows, LANE)
    true2d = true_flat.reshape(rows, LANE)

    def in_index_map(p, i):
        # Clamp the (at most one) empty trailing step to a valid block so its
        # DMA stays in bounds; the kernel skips its accumulation.
        return (jnp.minimum(p * blocks_per_chunk + i, blocks_total - 1), 0)

    kernel = functools.partial(
        _focal_loss_kernel,
        gamma=gamma, alpha=alpha,
        blocks_total=blocks_total, blocks_per_chunk=blocks_per_chunk,
        block_rows=block_rows, tail_valid=tail_valid,
    )

    partial_sums = pl.pallas_call(
        kernel,
        out_shape=jax.ShapeDtypeStruct((NUM_PARALLEL * SUBLANE, LANE), jnp.float32),
        grid_spec=pltpu.PrefetchScalarGridSpec(
            num_scalar_prefetch=0,
            grid=(NUM_PARALLEL, blocks_per_chunk),
            in_specs=[
                pl.BlockSpec((block_rows, LANE), in_index_map),
                pl.BlockSpec((block_rows, LANE), in_index_map),
            ],
            out_specs=pl.BlockSpec((SUBLANE, LANE), lambda p, i: (p, 0)),
        ),
        compiler_params=pltpu.CompilerParams(
            dimension_semantics=("parallel", "arbitrary"),
            vmem_limit_bytes=32 * 1024 * 1024,
        ),
    )(pred2d, true2d)

    # Tiny final cross-lane reduce + mean divisor (original element count).
    return jnp.sum(partial_sums) / jnp.float32(total)


def focal_loss_ref(pred, true, gamma=GAMMA, alpha=ALPHA):
    """Pure-JAX reference mirroring the PyTorch module (BCEWithLogits base, mean)."""
    x = pred.astype(jnp.float32)
    y = true.astype(jnp.float32)
    bce = jnp.maximum(x, 0.0) - x * y + jnp.log1p(jnp.exp(-jnp.abs(x)))
    p = jax.nn.sigmoid(x)
    p_t = y * p + (1.0 - y) * (1.0 - p)
    alpha_factor = y * alpha + (1.0 - y) * (1.0 - alpha)
    mod = jnp.power(1.0 - p_t, gamma)
    return jnp.mean(bce * alpha_factor * mod)


if __name__ == "__main__":
    key = jax.random.PRNGKey(0)
    k1, k2, k3, k4, k5, k6 = jax.random.split(key, 6)

    # NCHW logits and binary targets: (B, C, H, W) = (2, 4, 16, 16) -> 2048 elems
    # (exactly lane-aligned: no pad, no tail mask).
    pred = jax.random.normal(k1, (2, 4, 16, 16), dtype=jnp.float32) * 2.0
    true = (jax.random.uniform(k2, (2, 4, 16, 16)) > 0.5).astype(jnp.float32)
    out = jax.block_until_ready(focal_loss(pred, true))
    ref = focal_loss_ref(pred, true)
    assert jnp.allclose(out, ref, rtol=5e-3, atol=1e-6), (out, ref)

    # Ragged shape (not a multiple of 128): exercises the tail-mask path.
    pred2 = jax.random.normal(k3, (2, 3, 15, 17), dtype=jnp.float32) * 2.0
    true2 = (jax.random.uniform(k4, (2, 3, 15, 17)) > 0.5).astype(jnp.float32)
    out2 = jax.block_until_ready(focal_loss(pred2, true2))
    ref2 = focal_loss_ref(pred2, true2)
    assert jnp.allclose(out2, ref2, rtol=5e-3, atol=1e-6), (out2, ref2)

    # Odd number of real blocks over the 2-way parallel axis (tiny forced
    # block size): exercises the clamped/empty-block skip path + tail mask.
    pred3 = jax.random.normal(k5, (3, 1000), dtype=jnp.float32) * 2.0
    true3 = (jax.random.uniform(k6, (3, 1000)) > 0.5).astype(jnp.float32)
    out3 = jax.block_until_ready(focal_loss(pred3, true3, target_block_rows=8))
    ref3 = focal_loss_ref(pred3, true3)
    assert jnp.allclose(out3, ref3, rtol=5e-3, atol=1e-6), (out3, ref3)

    print("KERNEL_OK")
</pallas_src>

<mosaic_0001>
module attributes {stable_mosaic.version = 11 : i64} {
  func.func @_focal_loss_kernel(%arg0: i32, %arg1: i32, %arg2: memref<8x128xf32, #tpu.memory_space<vmem>>, %arg3: memref<8x128xf32, #tpu.memory_space<vmem>>, %arg4: memref<8x128xf32, #tpu.memory_space<vmem>>) attributes {dimension_semantics = [#tpu.dimension_semantics<parallel>, #tpu.dimension_semantics<arbitrary>], iteration_bounds = array<i64: 2, 1>, scalar_prefetch = 0 : i64, scratch_operands = 0 : i64, tpu.core_type = #tpu.core_type<tc>, window_params = [{transform_indices = @transform_0, window_bounds = array<i64: 8, 128>}, {transform_indices = @transform_1, window_bounds = array<i64: 8, 128>}, {transform_indices = @transform_2, window_bounds = array<i64: 8, 128>}]} {
    %c1_i32 = arith.constant 1 : i32
    %0 = arith.muli %arg0, %c1_i32 : i32
    %1 = arith.addi %0, %arg1 : i32
    %c0_i32 = arith.constant 0 : i32
    %2 = arith.cmpi eq, %arg1, %c0_i32 : i32
    %3 = arith.extui %2 : i1 to i32
    %c0_i32_0 = arith.constant 0 : i32
    %4 = arith.cmpi ne, %3, %c0_i32_0 : i32
    scf.if %4 {
      %cst = arith.constant 0.000000e+00 : f32
      %8 = vector.broadcast %cst : f32 to vector<8x128xf32>
      %c0 = arith.constant 0 : index
      %c0_2 = arith.constant 0 : index
      %9 = vector.load %arg4[%c0, %c0_2] : memref<8x128xf32, #tpu.memory_space<vmem>>, vector<8x128xf32>
      tpu.vector_store %arg4[%c0, %c0_2], %8 {strides = array<i32>} : memref<8x128xf32, #tpu.memory_space<vmem>>, vector<8x128xf32>,
    } else {
    }
    %c2_i32 = arith.constant 2 : i32
    %5 = arith.cmpi slt, %1, %c2_i32 : i32
    %6 = arith.extui %5 : i1 to i32
    %c0_i32_1 = arith.constant 0 : i32
    %7 = arith.cmpi ne, %6, %c0_i32_1 : i32
    scf.if %7 {
      %c0 = arith.constant 0 : index
      %c0_2 = arith.constant 0 : index
      %8 = vector.load %arg2[%c0, %c0_2] : memref<8x128xf32, #tpu.memory_space<vmem>>, vector<8x128xf32>
      %c0_3 = arith.constant 0 : index
      %c0_4 = arith.constant 0 : index
      %9 = vector.load %arg3[%c0_3, %c0_4] : memref<8x128xf32, #tpu.memory_space<vmem>>, vector<8x128xf32>
      %10 = math.absf %8 : vector<8x128xf32>
      %cst = arith.constant 0.000000e+00 : f32
      %11 = vector.broadcast %cst : f32 to vector<8x128xf32>
      %12 = arith.subf %11, %10 : vector<8x128xf32>
      %13 = math.exp %12 : vector<8x128xf32>
      %cst_5 = arith.constant 0.000000e+00 : f32
      %14 = vector.broadcast %cst_5 : f32 to vector<8x128xf32>
      %15 = arith.maximumf %8, %14 : vector<8x128xf32>
      %16 = arith.mulf %8, %9 : vector<8x128xf32>
      %17 = arith.subf %15, %16 : vector<8x128xf32>
      %18 = math.log1p %13 : vector<8x128xf32>
      %19 = arith.addf %17, %18 : vector<8x128xf32>
      %cst_6 = arith.constant 1.000000e+00 : f32
      %20 = vector.broadcast %cst_6 : f32 to vector<8x128xf32>
      %21 = arith.addf %20, %13 : vector<8x128xf32>
      %22 = tpu.reciprocal %21 {approx = true} : vector<8x128xf32> -> vector<8x128xf32>
      %cst_7 = arith.constant 0.000000e+00 : f32
      %23 = vector.broadcast %cst_7 : f32 to vector<8x128xf32>
      %24 = arith.cmpf oge, %8, %23 : vector<8x128xf32>
      %cst_8 = arith.constant 1.000000e+00 : f32
      %25 = vector.broadcast %cst_8 : f32 to vector<8x128xf32>
      %26 = arith.subf %25, %22 : vector<8x128xf32>
      %27 = arith.select %24, %22, %26 : vector<8x128xi1>, vector<8x128xf32>
      %28 = arith.addf %27, %9 : vector<8x128xf32>
      %cst_9 = arith.constant 2.000000e+00 : f32
      %29 = vector.broadcast %cst_9 : f32 to vector<8x128xf32>
      %30 = arith.mulf %29, %9 : vector<8x128xf32>
      %31 = arith.mulf %30, %27 : vector<8x128xf32>
      %32 = arith.subf %28, %31 : vector<8x128xf32>
      %cst_10 = arith.constant 0.000000e+00 : f32
      %33 = vector.broadcast %cst_10 : f32 to vector<8x128xf32>
      %34 = arith.maximumf %32, %33 : vector<8x128xf32>
      %cst_11 = arith.constant -5.000000e-01 : f32
      %35 = vector.broadcast %cst_11 : f32 to vector<8x128xf32>
      %36 = arith.mulf %9, %35 : vector<8x128xf32>
      %cst_12 = arith.constant 7.500000e-01 : f32
      %37 = vector.broadcast %cst_12 : f32 to vector<8x128xf32>
      %38 = arith.addf %37, %36 : vector<8x128xf32>
      %39 = math.sqrt %34 : vector<8x128xf32>
      %40 = arith.mulf %34, %39 : vector<8x128xf32>
      %41 = arith.mulf %19, %38 : vector<8x128xf32>
      %42 = arith.mulf %41, %40 : vector<8x128xf32>
      %c0_13 = arith.constant 0 : index
      %c0_14 = arith.constant 0 : index
      %43 = vector.load %arg4[%c0_13, %c0_14] : memref<8x128xf32, #tpu.memory_space<vmem>>, vector<8x128xf32>
      %44 = vector.shape_cast %42 : vector<8x128xf32> to vector<1x8x128xf32>
      %cst_15 = arith.constant dense<0.000000e+00> : vector<8x128xf32>
      %45 = vector.multi_reduction <add>, %44, %cst_15 [0] : vector<1x8x128xf32> to vector<8x128xf32>
      %46 = arith.addf %43, %45 : vector<8x128xf32>
      %c0_16 = arith.constant 0 : index
      %c0_17 = arith.constant 0 : index
      %47 = vector.load %arg4[%c0_16, %c0_17] : memref<8x128xf32, #tpu.memory_space<vmem>>, vector<8x128xf32>
      tpu.vector_store %arg4[%c0_16, %c0_17], %46 {strides = array<i32>} : memref<8x128xf32, #tpu.memory_space<vmem>>, vector<8x128xf32>,
    } else {
    }
    return
  }
  func.func @transform_0(%arg0: i32, %arg1: i32) -> (i32, i32) {
    %c1_i32 = arith.constant 1 : i32
    %0 = arith.muli %arg0, %c1_i32 : i32
    %1 = arith.addi %0, %arg1 : i32
    %c1_i32_0 = arith.constant 1 : i32
    %2 = arith.minsi %1, %c1_i32_0 : i32
    %c0_i32 = arith.constant 0 : i32
    %c0_i32_1 = arith.constant 0 : i32
    return %2, %c0_i32 : i32, i32
  }
  func.func @transform_1(%arg0: i32, %arg1: i32) -> (i32, i32) {
    %c1_i32 = arith.constant 1 : i32
    %0 = arith.muli %arg0, %c1_i32 : i32
    %1 = arith.addi %0, %arg1 : i32
    %c1_i32_0 = arith.constant 1 : i32
    %2 = arith.minsi %1, %c1_i32_0 : i32
    %c0_i32 = arith.constant 0 : i32
    %c0_i32_1 = arith.constant 0 : i32
    return %2, %c0_i32 : i32, i32
  }
  func.func @transform_2(%arg0: i32, %arg1: i32) -> (i32, i32) {
    %c0_i32 = arith.constant 0 : i32
    %c0_i32_0 = arith.constant 0 : i32
    return %arg0, %c0_i32 : i32, i32
  }
}

</mosaic_0001>

<bundles_post_ra>
// kernel: tpu_custom_call.1
= control target key start
LH: loop header
LB: loop body
LE: loop exit
PB: predicated region body
PF: predicated region fallthrough
CT: control target
= control target key end

     0   :  { %7 = vsyncpa [#allocation3], 0  ;;  %s966_s0 = inlined_call_operand.hbm [shape: f32[16,128], index: 0, kind: input, shape index: {}]   ;;  %s967_s1 = inlined_call_operand.hbm [shape: f32[16,128], index: 1, kind: input, shape index: {}]   ;;  %s968_s2 = inlined_call_operand.hbm [shape: f32[16,128], index: 2, kind: output, shape index: {}]  }
   0x1   :  { %9 = vsyncpa [#allocation3 + $0x1], 0 }
   0x2   :  { %10 = vsyncpa [#allocation6], 0 }
   0x3   :  { %12 = vsyncpa [#allocation6 + $0x1], 0 }
   0x4   :  { %13 = vsyncpa [#allocation4], 0 }
   0x5   :  { %15 = vsyncpa [#allocation4 + $0x1], 0  ;;  %s710_s9 = smov 0   ;;  %s712_s10 = smov 0  }
   0x6   :  { %s714_s11 = smov 0   ;;  %s716_s12 = smov 0  }
   0x7   :  { %s718_s13 = smov 0   ;;  %s720_s14 = smov 0  }
   0x8   :  { %s722_s15 = smov 0   ;;  %s724_s16 = smov 0  }
   0x9   :  { %s726_s17 = smov 0  }
   0xa LB: > { %s402_s18 = sadd.s32 4294967295, %s689_s17   ;;  %s403_s19 = sadd.s32 4294967294, %s689_s17   ;;  %s689_s17 = sphi %s726_s17, %s21_s17   ;;  %s685_s16 = sphi %s724_s16, %s993_s16   ;;  %s681_s15 = sphi %s722_s15, %s992_s15   ;;  %s677_s14 = sphi %s720_s14, %s991_s14   ;;  %s673_s13 = sphi %s718_s13, %s990_s13   ;;  %s669_s12 = sphi %s716_s12, %s989_s12   ;;  %s665_s11 = sphi %s714_s11, %s988_s11   ;;  %s661_s10 = sphi %s712_s10, %s987_s10   ;;  %s657_s9 = sphi %s710_s9, %s986_s9  }
   0xb   : > { %s33_s20 = sadd.s32 1, %s685_s16  ;;  %p38_p0 = scmp.lt.s32.totalorder %s685_s16, 1 }
   0xc   : > { %p35_p1 = scmp.ge.s32.totalorder %s33_s20, 2  ;;  %s46_s21 = sadd.s32 1, %s677_s14 }
   0xd   : > { %s759_s22 = scalar_select %p38_p0, %s685_s16, 1 }
   0xe   : > { %s995_s20 = smov (%p35_p1, %s33_s20), 0  ;;  %p53_p2 = scmp.ne.s32.totalorder %s677_s14, %s673_s13 }
   0xf   : > { %p54_p3 = scmp.eq.s32.totalorder %s689_s17, 0  ;;  %p41_p4 = scmp.lt.s32.totalorder %s995_s20, 1 }
  0x10   : > { %p59_p5 = scmp.ne.s32.totalorder %s673_s13, %s669_s12  ;;  %p60_p7 = scmp.eq.s32.totalorder %s402_s18, 0 }
  0x11   : > { %p768_p6 = por %p54_p3, %p53_p2  ;;  %s101_s26 = ssub.s32 %s685_s16, %s995_s20 }
  0x12   : > { %s42_s24 = scalar_select %p41_p4, %s995_s20, 1 }
  0x13   : > { %p773_p8 = por %p60_p7, %p59_p5  ;;  %p102_p9 = scmp.eq.s32.totalorder %s101_s26, 0 }
  0x14   : > { %s43_s27 = ssub.s32 %s759_s22, %s42_s24  ;;  %s104_s28 = sadd.s32 1, %s665_s11 }
  0x15   : > { %s973_s25 = scalar_select %p773_p8, 1, 0 }
  0x16   : > { %p44_p10 = scmp.eq.s32.totalorder %s43_s27, 0  ;;  %p114_p11 = scmp.ne.s32.totalorder %s665_s11, %s661_s10 }
  0x17   : > { %s782_s29 = scalar_select %p102_p9, %s665_s11, %s104_s28  }
  0x18   : > { %s785_s30 = scalar_select %p44_p10, %s677_s14, %s46_s21  }
  0x19   : > { %p115_p12 = scmp.eq.s32.totalorder %s402_s18, 1  ;;  %p120_p13 = scmp.ne.s32.totalorder %s661_s10, %s657_s9 }
  0x1a   : > { %p121_p0 = scmp.eq.s32.totalorder %s403_s19, 1  ;;  %p436_p4 = scmp.lt.s32.totalorder %s689_s17, 2 }
  0x1b   : > { %p791_p1 = por %p115_p12, %p114_p11  ;;  %s802_s5 = sand.u32 1, %s677_s14  }
  0x1c   : > { %p796_p3 = por %p121_p0, %p120_p13  ;;  %s407_s6 = sshll.u32 %s759_s22, 7 }
  0x1d   : > { %s974_s3 = scalar_select %p791_p1, 1, 0 }
  0x1e   : > { %s975_s4 = scalar_select %p796_p3, 1, 0 }
  0x1f   : > { %s969_s7 = sshll.u32 %s802_s5, 3  ;;  %s811_s18 = scalar_lea.hbm %s966_s0, %s407_s6 }
  0x20   : > { %s145_s19 = scalar_lea.vmem [#allocation2], %s969_s7  ;;  %p817_p5 = pnand %p436_p4, %p768_p6 }
  0x21   : > { %s155_s21 = sshll.u32 %s145_s19, 4  ;;  %s142_s26 = scalar_lea.sflag [#allocation3], %s802_s5  ;;  %s821_s21 = int_to_ptr.vmem [resolvable:$true] %s155_s21 }
  0x22   : > { %s519_s27 = scalar_lea.hbm %s811_s18, 128  ;;  %p521_p11 = pneg %p817_p5 }
  0x23   : > { %p520_p10 = scmp.ne.s32.totalorder %s811_s18, %s519_s27  ;;  %s524_s8 = scalar_lea.hbm %s966_s0, 256 }
  0x24   : > { %p525_p6 = scmp.lt.u32.totalorder %s811_s18, %s966_s0  ;;  %p526_p0 = scmp.lt.u32.totalorder %s524_s8, %s519_s27 }
  0x25   : > { %p522_p12 = pnand %p521_p11, %p520_p10  ;;  %p528_p2 = scmp.lt.u32.totalorder %s519_s27, %s811_s18 }
  0x26   : > { %p527_p4 = por %p526_p0, %p525_p6 }
  0x27   : > { %p523_p13 = pneg %p522_p12 }
  0x28   : > { %p529_p7 = por %p528_p2, %p527_p4 }
  0x2a   : > { %p530_p9 = pnand %p529_p7, %p523_p13 }
  0x2c   : > { %533 = shalt.err (!%p530_p9)
}
  0x2d   : > { %s534_s7 = scalar_lea.vmem %s821_s21, 128  ;;  %s691_s23 = smov [#allocation2]  }
  0x2e   : > { %p535_p10 = scmp.ne.s32.totalorder %s821_s21, %s534_s7  ;;  %s539_s28 = sshll.u32 %s691_s23, 4  ;;  %s540_s28 = int_to_ptr.vmem [resolvable:$false] %s539_s28 }
  0x2f   : > { %s541_s12 = scalar_lea.vmem %s540_s28, 256  ;;  %p542_p1 = scmp.lt.s32.totalorder %s821_s21, %s540_s28 }
  0x30   : > { %p537_p12 = pnand %p535_p10, %p521_p11  ;;  %p543_p6 = scmp.lt.s32.totalorder %s541_s12, %s534_s7 }
  0x32   : > { %p538_p3 = pneg %p537_p12  ;;  %p544_p0 = por %p543_p6, %p542_p1 }
  0x34   : > { %p545_p2 = pnand %p544_p0, %p538_p3 }
  0x36   : > { %548 = shalt.err (!%p545_p2)
}
  0x37   : > { %428 = dma.hbm_to_vmem [thread:$0]  (!%p817_p5), %s811_s18, 128, %s821_s21, %s142_s26  }
  0x38   : > { %p977_p7 = scmp.lt.s32.totalorder %s689_s17, 3  ;;  %p978_p9 = scmp.ge.s32.totalorder %s689_s17, 1 }
  0x39   : > { %s864_s19 = scalar_lea.hbm %s967_s1, %s407_s6  ;;  %s980_s23 = sshll.u32 %s802_s5, 3 }
  0x3a   : > { %p855_p13 = pnand %p978_p9, %p977_p7  ;;  %s166_s28 = scalar_lea.vmem [#allocation5], %s980_s23 }
  0x3b   : > { %s176_s12 = sshll.u32 %s166_s28, 4  ;;  %s163_s18 = scalar_lea.sflag [#allocation6], %s802_s5  ;;  %s177_s12 = int_to_ptr.vmem [resolvable:$true] %s176_s12 }
  0x3c   : > { %s979_s27 = scalar_select %p855_p13, 1, 0 }
  0x3d   : > { %s549_s21 = scalar_lea.hbm %s864_s19, 128  ;;  %s554_s6 = scalar_lea.hbm %s967_s1, 256 }
  0x3e   : > { %p550_p1 = scmp.ne.s32.totalorder %s864_s19, %s549_s21  ;;  %p555_p10 = scmp.lt.u32.totalorder %s864_s19, %s967_s1 }
  0x3f   : > { %p556_p12 = scmp.lt.u32.totalorder %s554_s6, %s549_s21  ;;  %p558_p0 = scmp.lt.u32.totalorder %s549_s21, %s864_s19 }
  0x40   : > { %p552_p3 = pnand %p550_p1, %p521_p11 }
  0x41   : > { %p557_p6 = por %p556_p12, %p555_p10 }
  0x42   : > { %p553_p4 = pneg %p552_p3 }
  0x43   : > { %p559_p2 = por %p558_p0, %p557_p6 }
  0x45   : > { %p560_p7 = pnand %p559_p2, %p553_p4 }
  0x47   : > { %563 = shalt.err (!%p560_p7)
}
  0x48   : > { %s564_s5 = scalar_lea.vmem %s177_s12, 128  ;;  %s692_s23 = smov [#allocation5]  }
  0x49   : > { %p565_p9 = scmp.ne.s32.totalorder %s177_s12, %s564_s5  ;;  %s569_s28 = sshll.u32 %s692_s23, 4  ;;  %s570_s28 = int_to_ptr.vmem [resolvable:$false] %s569_s28 }
  0x4a   : > { %s571_s22 = scalar_lea.vmem %s570_s28, 256  ;;  %p572_p8 = scmp.lt.s32.totalorder %s177_s12, %s570_s28 }
  0x4b   : > { %p567_p1 = pnand %p565_p9, %p521_p11  ;;  %p573_p13 = scmp.lt.s32.totalorder %s571_s22, %s564_s5 }
  0x4d   : > { %p568_p3 = pneg %p567_p1  ;;  %p574_p10 = por %p573_p13, %p572_p8 }
  0x4f   : > { %p575_p12 = pnand %p574_p10, %p568_p3 }
  0x51   : > { %578 = shalt.err (!%p575_p12)
}
  0x52   : > { %431 = dma.hbm_to_vmem [thread:$0]  (!%p817_p5), %s864_s19, 128, %s177_s12, %s163_s18  }
  0x53   : > { %p981_p4 = scmp.ne.s32.totalorder %s979_s27, 0 }
  0x54   : > { %s187_s21 = sand.u32 (!%p981_p4), 1, %s673_s13   ;;  %p982_p11 = scmp.ne.s32.totalorder (!%p981_p4), %s973_s25, 0 }
  0x55   : > { %185 = sbr.rel (%p981_p4) target bundleno = 183 (0xb7), region = 28  ;;  %s411_s26 = sshll.u32 (!%p981_p4), %s187_s21, 3 }
  0x56   : > { %s188_s6 = scalar_lea.sflag (!%p981_p4), [#allocation3], %s187_s21  ;;  %s191_s7 = scalar_lea.vmem (!%p981_p4), [#allocation2], %s411_s26 }
  0x5c   : > { %644 = dma.done.wait (%p982_p11), %s188_s6, 128  }
  0x5d   : > { %646 = vsyncadd (%p982_p11), %s188_s6, 4294967168  ;;  %s197_s8 = scalar_lea.sflag [#allocation6], %s187_s21  ;;  %s200_s5 = scalar_lea.vmem [#allocation5], %s411_s26 }
  0x5e   : > { %648 = dma.done.wait (%p982_p11), %s197_s8, 128  }
  0x5f   : > { %650 = vsyncadd (%p982_p11), %s197_s8, 4294967168  ;;  %s223_s24 = sand.u32 1, %s661_s10   ;;  %v693_v0 = vmov 0.0   ;;  %p414_p8 = scmp.ge.s32.totalorder %s681_s15, 2 }
  0x60   : > { %s413_s27 = sshll.u32 %s223_s24, 3  ;;  %v242_v1 = vld [vmem:[%s191_s7] sm:$0xff] (!%p414_p8)  ;;  %v243_v7 = vld [vmem:[%s200_s5] sm:$0xff] (!%p414_p8) }
  0x61   : > { %s902_s19 = scalar_lea.vmem [#allocation7], %s413_s27  ;;  %241 = sbr.rel (%p414_p8) target bundleno = 158 (0x9e), region = 44  ;;  %v244_v2 = vand.u32 (!%p414_p8), 2147483647, %v242_v1  ;;  %vm263_vm0 = vcmp.ge.f32.partialorder (!%p414_p8), %v242_v1, 0.0  ;;  %v267_v9 = vmul.f32 (!%p414_p8), 2.0, %v243_v7  ;;  %v249_v21 = vmul.f32 (!%p414_p8), %v243_v7, %v242_v1 }
  0x62   : > { %237 = vst [vmem:[%s902_s19] sm:$0xff] %v693_v0  ;;  %v248_v20 = vmax.f32 (!%p414_p8), %v242_v1, 0.0  ;;  %v271_v25 = vmul.f32 (!%p414_p8), -0.5, %v243_v7 }
  0x63   : > { %v245_v3 = vsub.f32 (!%p414_p8), 0.0, %v244_v2 }
  0x64   : > { %v250_v24 = vsub.f32 (!%p414_p8), %v248_v20, %v249_v21  ;;  %v272_v28 = vadd.f32 (!%p414_p8), 0.75, %v271_v25 }
  0x65   : > { %v246_v4 = vmul.f32 (!%p414_p8), 1.442695, %v245_v3 }
  0x67   : > { %511 = vpow2.f32 (!%p414_p8), %v246_v4 }
  0x69   : > { %v283_v36 = vld [vmem:[%s902_s19] sm:$0xff] }
  0x71   : > { %v512_v5 = vpop.eup %511 }
  0x72   : > { %v251_v6 = vadd.f32 1.0, %v512_v5  ;;  %v254_v12 = vmul.f32 -0.5, %v512_v5  ;;  %v257_v19 = vand.u32 2147483647, %v512_v5 }
  0x74   : > { %513 = vrcp.f32 %v251_v6  ;;  %v255_v16 = vadd.f32 1.0, %v254_v12  ;;  %vm258_vm1 = vcmp.lt.f32.partialorder %v257_v19, 0.0004427343 }
  0x75   : > { %515 = vlog2.f32 %v251_v6 }
  0x76   : > { %v256_v23 = vmul.f32 %v512_v5, %v255_v16 }
  0x7e   : > { %v514_v8 = vpop.eup %513 }
  0x7f   : > { %v264_v10 = vsub.f32 1.0, %v514_v8  ;;  %v516_v18 = vpop.eup %515 }
  0x80   : > { %v253_v22 = vmul.f32 0.6931472, %v516_v18 }
  0x81   : > { %v265_v11 = vsel %vm263_vm0, %v514_v8, %v264_v10 }
  0x82   : > { %v266_v13 = vadd.f32 %v265_v11, %v243_v7  ;;  %v268_v14 = vmul.f32 %v267_v9, %v265_v11  ;;  %v259_v26 = vsel %vm258_vm1, %v256_v23, %v253_v22 }
  0x83   : > { %v260_v27 = vadd.f32 %v259_v26, %v250_v24 }
  0x84   : > { %v269_v15 = vsub.f32 %v266_v13, %v268_v14 }
  0x85   : > { %v281_v33 = vmul.f32 %v272_v28, %v260_v27 }
  0x86   : > { %v270_v17 = vmax.f32 %v269_v15, 0.0 }
  0x88   : > { %517 = vrsqrt.f32 %v270_v17  ;;  %vm275_vm2 = vcmp.eq.f32.partialorder %v270_v17, inf  ;;  %v278_v30 = vand.u32 2147483648, %v270_v17  ;;  %vm277_vm3 = vcmp.eq.f32.partialorder %v270_v17, 0.0 }
  0x92   : > { %v518_v29 = vpop.eup %517 }
  0x93   : > { %v274_v31 = vmul.f32 %v518_v29, %v270_v17 }
  0x95   : > { %v276_v32 = vsel %vm275_vm2, %v270_v17, %v274_v31 }
  0x96   : > { %v279_v34 = vsel %vm277_vm3, %v278_v30, %v276_v32 }
  0x97   : > { %v280_v35 = vmul.f32 %v279_v34, %v270_v17 }
  0x99   : > { %v282_v37 = vmul.f32 %v281_v33, %v280_v35 }
  0x9b   : > { %v285_v38 = vadd.f32 %v283_v36, %v282_v37 }
  0x9d   : > { %286 = vst [vmem:[%s902_s19] sm:$0xff] %v285_v38 }
  0x9e PF: > { %s416_s25 = sshll.u32 %s681_s15, 7  ;;  %s301_s28 = sshll.u32 %s902_s19, 4  ;;  %s302_s28 = int_to_ptr.vmem [resolvable:$true] %s301_s28 }
  0x9f   : > { %s912_s23 = scalar_lea.hbm %s968_s2, %s416_s25  ;;  %s288_s22 = scalar_lea.sflag [#allocation4], %s223_s24 }
  0xa0   : > { %s579_s21 = scalar_lea.vmem %s302_s28, 128  ;;  %p983_p13 = scmp.ne.s32.totalorder %s974_s3, 0 }
  0xa1   : > { %p580_p5 = scmp.ne.s32.totalorder %s302_s28, %s579_s21  ;;  %s694_s26 = smov [#allocation7]  }
  0xa2   : > { %s583_s6 = sshll.u32 %s694_s26, 4  ;;  %s584_s6 = int_to_ptr.vmem [resolvable:$false] %s583_s6 }
  0xa3   : > { %p581_p6 = pnand %p580_p5, %p983_p13  ;;  %s585_s7 = scalar_lea.vmem %s584_s6, 256 }
  0xa4   : > { %p586_p2 = scmp.lt.s32.totalorder %s302_s28, %s584_s6  ;;  %p587_p7 = scmp.lt.s32.totalorder %s585_s7, %s579_s21 }
  0xa5   : > { %p582_p0 = pneg %p581_p6 }
  0xa6   : > { %p588_p9 = por %p587_p7, %p586_p2 }
  0xa8   : > { %p589_p1 = pnand %p588_p9, %p582_p0 }
  0xaa   : > { %592 = shalt.err (!%p589_p1)
}
  0xab   : > { %s593_s15 = scalar_lea.hbm %s912_s23, 128  ;;  %s597_s24 = scalar_lea.hbm %s968_s2, 256 }
  0xac   : > { %p594_p3 = scmp.ne.s32.totalorder %s912_s23, %s593_s15  ;;  %p598_p4 = scmp.lt.u32.totalorder %s912_s23, %s968_s2 }
  0xad   : > { %p599_p11 = scmp.lt.u32.totalorder %s597_s24, %s593_s15  ;;  %p601_p5 = scmp.lt.u32.totalorder %s593_s15, %s912_s23 }
  0xae   : > { %p595_p10 = pnand %p594_p3, %p983_p13 }
  0xaf   : > { %p600_p8 = por %p599_p11, %p598_p4 }
  0xb0   : > { %p596_p12 = pneg %p595_p10 }
  0xb1   : > { %p602_p6 = por %p601_p5, %p600_p8 }
  0xb3   : > { %p603_p0 = pnand %p602_p6, %p596_p12 }
  0xb5   : > { %606 = shalt.err (!%p603_p0)
}
  0xb6   : > { %423 = dma.vmem_to_hbm [thread:$0]  (%p983_p13), %s302_s28, 128, %s912_s23, %s288_s22  }
  0xb7 PF: > { %s313_s25 = sand.u32 1, %s657_s9   ;;  %p984_p2 = scmp.ne.s32.totalorder %s975_s4, 0 }
  0xb8   : > { %p985_p7 = scmp.ge.s32.totalorder %s689_s17, 2  ;;  %s314_s12 = scalar_lea.sflag [#allocation4], %s313_s25 }
  0xba   : > { %p433_p9 = pnand %p985_p7, %p984_p2 }
  0xbc   : > { %652 = dma.done.wait (!%p433_p9), %s314_s12, 128  }
  0xbd   : > { %654 = vsyncadd (!%p433_p9), %s314_s12, 4294967168  ;;  %s21_s17 = sadd.s32 1, %s689_s17   ;;  %s986_s9 = smov %s661_s10 }
  0xbe   : > { %p18_p1 = scmp.ge.s32.totalorder %s21_s17, 4   ;;  %s987_s10 = smov %s665_s11 }
  0xbf   : > { %s988_s11 = smov %s782_s29  ;;  %s989_s12 = smov %s673_s13 }
  0xc0   : > { %s990_s13 = smov %s677_s14  ;;  %s991_s14 = smov %s785_s30 }
  0xc1   : > { %s992_s15 = smov %s685_s16  ;;  %s993_s16 = smov %s995_s20 }
  0xc2   :  { %20 = sbr.rel (!%p18_p1) target bundleno = 10 (0xa), region = 94 }
  0xc9   :  { %319 = vsyncpa [#allocation3], 1 }
  0xca   :  { %321 = vsyncpa [#allocation3 + $0x1], 1 }
  0xcb   :  { %322 = vsyncpa [#allocation6], 1 }
  0xcc   :  { %324 = vsyncpa [#allocation6 + $0x1], 1 }
  0xcd   :  { %325 = vsyncpa [#allocation4], 1 }
  0xce   :  { %327 = vsyncpa [#allocation4 + $0x1], 1 }

</bundles_post_ra>
